<compile_context>
chip_gen: v7x
topology: tpu7x:2x2x1
jax: 0.10.0
libtpu: 0.0.40
codegen_flags: <defaults>
</compile_context>

<pallas_src>
import jax
import jax.numpy as jnp
from jax.experimental import pallas as pl
from jax.experimental.pallas import tpu as pltpu


def _sqr_kernel(x_ref, o_ref):
    # Elementwise square of the current lane-dense VMEM tile (VPU only).
    x = x_ref[...]
    o_ref[...] = x * x


_TARGET_TILE_BYTES = 4 * 1024 * 1024    # per-block; 2 in + 2 out bufs ~ 16 MiB
_VMEM_LIMIT_BYTES = 32 * 1024 * 1024    # explicit: safe on v5e(128) v6e(128) v7x(64)


def _sublane_multiple(dtype) -> int:
    # f32 -> 8, bf16/f16 -> 16, int8/fp8 -> 32 (sub-32-bit packs along sublanes).
    bits = jnp.dtype(dtype).itemsize * 8
    return max(8, 256 // bits)


def _sqr_2d(x2d: jax.Array, *, tile_rows: int, donate: bool) -> jax.Array:
    rows, cols = x2d.shape
    itemsize = jnp.dtype(x2d.dtype).itemsize
    grid = (pl.cdiv(rows, tile_rows),)   # ragged last block is masked by Pallas
    return pl.pallas_call(
        _sqr_kernel,
        out_shape=jax.ShapeDtypeStruct((rows, cols), x2d.dtype),
        grid=grid,
        in_specs=[pl.BlockSpec((tile_rows, cols), lambda i: (i, 0))],
        out_specs=pl.BlockSpec((tile_rows, cols), lambda i: (i, 0)),
        compiler_params=pltpu.CompilerParams(
            dimension_semantics=("parallel",),
            vmem_limit_bytes=_VMEM_LIMIT_BYTES,
        ),
        cost_estimate=pl.CostEstimate(
            flops=rows * cols,
            transcendentals=0,
            bytes_accessed=2 * rows * cols * itemsize,
        ),
        input_output_aliases=({0: 0} if donate else {}),
    )(x2d)


def sqr(x: jax.Array, *, donate: bool = False) -> jax.Array:
    """Pallas TPU version of Sqr.forward: returns x ** 2 with identical
    shape/dtype semantics to the PyTorch module (works for any shape)."""
    orig_shape = x.shape
    dtype = x.dtype
    n = x.size
    if n == 0:
        return x * x  # empty: nothing to launch

    itemsize = jnp.dtype(dtype).itemsize
    sub = _sublane_multiple(dtype)

    flat = x.reshape(-1)
    cols = 1024 if n >= 1024 else 128
    m = (n // cols) * cols          # lane-aligned prefix length
    tail = n - m                    # < cols leftover elements

    if m == 0:
        # Whole input smaller than one lane-dense row: single block whose
        # shape equals the full array dims (no (8,128) divisibility needed).
        out = _sqr_2d(flat.reshape(1, n), tile_rows=1, donate=donate)
        return out.reshape(orig_shape)

    rows = m // cols
    tile_cap = max(sub, (_TARGET_TILE_BYTES // (cols * itemsize)) // sub * sub)
    if rows > tile_cap:
        # Large input: byte-sized tiles; last block may be ragged (masked).
        tile_rows = tile_cap
    elif rows >= 2 * sub:
        # Mid-size input: force >= 2 blocks so both v7x TensorCores get work.
        tile_rows = pl.cdiv(pl.cdiv(rows, 2), sub) * sub
    else:
        # Tiny input: one block covering the whole array (== full dims).
        tile_rows = rows

    main_out = _sqr_2d(
        flat[:m].reshape(rows, cols),
        tile_rows=tile_rows,
        donate=donate and tail == 0,
    )

    if tail == 0:
        return main_out.reshape(orig_shape)

    # Lane-misaligned tail: square the < cols leftover with plain JAX instead
    # of padding (and later slicing) the entire tensor.
    t = flat[m:]
    tail_out = t * t
    return jnp.concatenate([main_out.reshape(-1), tail_out]).reshape(orig_shape)


if __name__ == "__main__":
    key = jax.random.PRNGKey(0)

    # Small NCHW input consistent with the module's usage (aligned fast path).
    x = jax.random.normal(key, (2, 4, 16, 16), dtype=jnp.float32)
    y = sqr(x)
    jax.block_until_ready(y)
    ref = x ** 2
    assert y.shape == ref.shape and y.dtype == ref.dtype
    assert jnp.allclose(y, ref, atol=1e-6, rtol=1e-6)

    # Lane-misaligned tiny shape (single full-array block path).
    x2 = jax.random.normal(jax.random.PRNGKey(1), (3, 5, 7), dtype=jnp.float32)
    y2 = sqr(x2)
    jax.block_until_ready(y2)
    assert jnp.allclose(y2, x2 ** 2, atol=1e-6, rtol=1e-6)

    # Multi-block path with a ragged (masked) last block, no padding needed.
    x3 = jax.random.normal(jax.random.PRNGKey(2), (4, 1024, 33), dtype=jnp.float32)
    y3 = sqr(x3)
    jax.block_until_ready(y3)
    assert jnp.allclose(y3, x3 ** 2, atol=1e-6, rtol=1e-6)

    # Aligned prefix + JAX tail + concat path.
    x4 = jax.random.normal(jax.random.PRNGKey(3), (17, 1000), dtype=jnp.float32)
    y4 = sqr(x4)
    jax.block_until_ready(y4)
    assert jnp.allclose(y4, x4 ** 2, atol=1e-6, rtol=1e-6)

    # bf16 path (dtype-aware sublane rounding).
    x5 = jax.random.normal(jax.random.PRNGKey(4), (16, 1024)).astype(jnp.bfloat16)
    y5 = sqr(x5)
    jax.block_until_ready(y5)
    assert jnp.array_equal(y5, x5 * x5)

    print("KERNEL_OK")
</pallas_src>

<mosaic_0001>
module attributes {stable_mosaic.version = 11 : i64} {
  func.func @_sqr_kernel(%arg0: i32, %arg1: memref<2x1024xf32, #tpu.memory_space<vmem>>, %arg2: memref<2x1024xf32, #tpu.memory_space<vmem>>) attributes {dimension_semantics = [#tpu.dimension_semantics<parallel>], iteration_bounds = array<i64: 1>, scalar_prefetch = 0 : i64, scratch_operands = 0 : i64, tpu.core_type = #tpu.core_type<tc>, window_params = [{transform_indices = @transform_0, window_bounds = array<i64: 2, 1024>}, {transform_indices = @transform_1, window_bounds = array<i64: 2, 1024>}]} {
    %c0 = arith.constant 0 : index
    %c0_0 = arith.constant 0 : index
    %0 = vector.load %arg1[%c0, %c0_0] : memref<2x1024xf32, #tpu.memory_space<vmem>>, vector<2x1024xf32>
    %1 = arith.mulf %0, %0 : vector<2x1024xf32>
    %c0_1 = arith.constant 0 : index
    %c0_2 = arith.constant 0 : index
    %2 = vector.load %arg2[%c0_1, %c0_2] : memref<2x1024xf32, #tpu.memory_space<vmem>>, vector<2x1024xf32>
    tpu.vector_store %arg2[%c0_1, %c0_2], %1 {strides = array<i32>} : memref<2x1024xf32, #tpu.memory_space<vmem>>, vector<2x1024xf32>,
    return
  }
  func.func @transform_0(%arg0: i32) -> (i32, i32) {
    %c0_i32 = arith.constant 0 : i32
    %c0_i32_0 = arith.constant 0 : i32
    return %arg0, %c0_i32 : i32, i32
  }
  func.func @transform_1(%arg0: i32) -> (i32, i32) {
    %c0_i32 = arith.constant 0 : i32
    %c0_i32_0 = arith.constant 0 : i32
    return %arg0, %c0_i32 : i32, i32
  }
}

</mosaic_0001>

<bundles_post_ra>
// kernel: tpu_custom_call.1
= control target key start
LH: loop header
LB: loop body
LE: loop exit
PB: predicated region body
PF: predicated region fallthrough
CT: control target
= control target key end

     0   :  { %6 = vsyncpa [#allocation3], 0  ;;  %s128_s0 = inlined_call_operand.hbm [shape: f32[2,1024], index: 0, kind: input, shape index: {}]   ;;  %s129_s1 = inlined_call_operand.hbm [shape: f32[2,1024], index: 1, kind: output, shape index: {}]  }
   0x1   :  { %7 = vsyncpa [#allocation4], 0  ;;  %s92_s6 = smov [#allocation2]   ;;  %s44_s10 = scalar_lea.hbm %s128_s0, 256 }
   0x2   :  { %s14_s7 = sshll.u32 %s92_s6, 4  ;;  %p45_p0 = scmp.ne.s32.totalorder %s128_s0, %s44_s10  ;;  %s15_s7 = int_to_ptr.vmem [resolvable:$true] %s14_s7 }
   0x3   :  { %p48_p1 = scmp.lt.u32.totalorder %s44_s10, %s128_s0 }
   0x5   :  { %p50_p2 = pnand %p48_p1, %p45_p0 }
   0x7   :  { %53 = shalt.err (!%p50_p2)
}
   0x8   :  { %s54_s15 = scalar_lea.vmem %s15_s7, 256  ;;  %p59_p4 = scmp.lt.s32.totalorder %s15_s7, %s15_s7 }
   0x9   :  { %p55_p3 = scmp.ne.s32.totalorder %s15_s7, %s54_s15  ;;  %p60_p5 = scmp.lt.s32.totalorder %s54_s15, %s54_s15 }
   0xb   :  { %p61_p6 = por %p60_p5, %p59_p4 }
   0xd   :  { %p62_p7 = pnand %p61_p6, %p55_p3 }
   0xf   :  { %65 = shalt.err (!%p62_p7)
}
  0x10   :  { %17 = dma.hbm_to_vmem [thread:$0]  %s128_s0, 256, %s15_s7, [#allocation3]  }
  0x11   :  { %88 = dma.done.wait [#allocation3], 256  }
  0x12   :  { %89 = vsyncadd [#allocation3], 4294967040  ;;  %s93_s18 = smov [#allocation5]   ;;  %v21_v0 = vld [vmem:[#allocation2] sm:$0xff]  ;;  %v22_v1 = vld [vmem:[#allocation2 + $0x8] sm:$0xff] }
  0x13   :  { %s33_s19 = sshll.u32 %s93_s18, 4  ;;  %v23_v2 = vmul.f32 %v21_v0, %v21_v0  ;;  %v24_v3 = vmul.f32 %v22_v1, %v22_v1  ;;  %s34_s19 = int_to_ptr.vmem [resolvable:$true] %s33_s19 }
  0x14   :  { %s66_s20 = scalar_lea.vmem %s34_s19, 256  ;;  %p71_p9 = scmp.lt.s32.totalorder %s34_s19, %s34_s19 }
  0x15   :  { %25 = vst [vmem:[#allocation5] sm:$0xff] %v23_v2  ;;  %26 = vst [vmem:[#allocation5 + $0x8] sm:$0xff] %v24_v3  ;;  %p67_p8 = scmp.ne.s32.totalorder %s34_s19, %s66_s20  ;;  %p72_p10 = scmp.lt.s32.totalorder %s66_s20, %s66_s20 }
  0x17   :  { %p73_p11 = por %p72_p10, %p71_p9 }
  0x19   :  { %p74_p12 = pnand %p73_p11, %p67_p8 }
  0x1b   :  { %77 = shalt.err (!%p74_p12)
}
  0x1c   :  { %s78_s22 = scalar_lea.hbm %s129_s1, 256 }
  0x1d   :  { %p79_p13 = scmp.ne.s32.totalorder %s129_s1, %s78_s22  ;;  %p82_p0 = scmp.lt.u32.totalorder %s78_s22, %s129_s1 }
  0x1f   :  { %p84_p1 = pnand %p82_p0, %p79_p13 }
  0x21   :  { %87 = shalt.err (!%p84_p1)
}
  0x22   :  { %36 = dma.vmem_to_hbm [thread:$0]  %s34_s19, 256, %s129_s1, [#allocation4]  }
  0x23   :  { %90 = dma.done.wait [#allocation4], 256  }
  0x24   :  { %91 = vsyncadd [#allocation4], 4294967040 }
  0x25   :  { %40 = vsyncpa [#allocation3], 1 }
  0x26   :  { %41 = vsyncpa [#allocation4], 1 }

</bundles_post_ra>
